<compile_context>
chip_gen: v5e
topology: v5e:2x2
jax: 0.10.0
libtpu: 0.0.40
codegen_flags: <defaults>
</compile_context>

<pallas_src>
import functools

import jax
import jax.numpy as jnp
from jax import lax
from jax.experimental import pallas as pl
from jax.experimental.pallas import tpu as pltpu

_LANE = 128
_SUBLANE = 8
_MAX_BLOCK_ROWS = 1024   # (1024, 128) f32 tile = 512 KiB per stream per buffer


def _fold_to_sublane_tile(v):
    """Sum a (R, 128) block down to (8, 128) with tile-aligned vector adds.

    R must be a multiple of 8.  Pure 2-D elementwise VPU adds (no per-step
    XLU reduce-to-scalar, no loop-carried scalar dependency).
    """
    chunks = [v[k * _SUBLANE:(k + 1) * _SUBLANE, :]
              for k in range(v.shape[0] // _SUBLANE)]
    while len(chunks) > 1:
        nxt = [a + b for a, b in zip(chunks[0::2], chunks[1::2])]
        if len(chunks) % 2:
            nxt.append(chunks[-1])
        chunks = nxt
    return chunks[0]


def _charb_partial_sum_kernel(*refs, eps, n_elem, block_rows, has_weight,
                              emit_wsum, needs_mask):
    """Per-block partial sums of sqrt((p-t)^2 + eps) [* w] -> (8,128) out block.

    When emit_wsum, also emits per-block partial sums of the (broadcast) weight
    so the 'mean' denominator needs no second HBM pass over the weight.
    """
    if has_weight:
        if emit_wsum:
            p_ref, t_ref, w_ref, v_out, w_out = refs
        else:
            p_ref, t_ref, w_ref, v_out = refs
            w_out = None
    else:
        p_ref, t_ref, v_out = refs
        w_ref = w_out = None

    i = pl.program_id(0)

    def compute(mask_tail):
        p = p_ref[...].astype(jnp.float32)
        t = t_ref[...].astype(jnp.float32)
        d = p - t
        v = jnp.sqrt(d * d + jnp.float32(eps))
        w = w_ref[...].astype(jnp.float32) if has_weight else None
        if has_weight:
            v = v * w
        if mask_tail:
            # Padded / out-of-bounds tail only ever lives in the last grid
            # block.  int32 flat index is fine for < 2**31 elements.
            base = i * (block_rows * _LANE)
            r = lax.broadcasted_iota(jnp.int32, (block_rows, _LANE), 0)
            c = lax.broadcasted_iota(jnp.int32, (block_rows, _LANE), 1)
            valid = (base + r * _LANE + c) < n_elem
            v = jnp.where(valid, v, jnp.float32(0.0))
            if emit_wsum:
                w = jnp.where(valid, w, jnp.float32(0.0))
        v_out[...] = _fold_to_sublane_tile(v)
        if emit_wsum:
            w_out[...] = _fold_to_sublane_tile(w)

    if needs_mask:
        last = pl.num_programs(0) - 1

        @pl.when(i != last)
        def _():
            compute(False)

        @pl.when(i == last)
        def _():
            compute(True)
    else:
        compute(False)


def _charb_elem_kernel(*refs, eps, loss_weight, has_weight):
    """Elementwise Charbonnier for reduction='none' (weight + loss_weight fused)."""
    if has_weight:
        p_ref, t_ref, w_ref, o_ref = refs
    else:
        p_ref, t_ref, o_ref = refs
        w_ref = None
    p = p_ref[...].astype(jnp.float32)
    t = t_ref[...].astype(jnp.float32)
    d = p - t
    v = jnp.sqrt(d * d + jnp.float32(eps))
    if has_weight:
        v = v * w_ref[...].astype(jnp.float32)
    if loss_weight != 1.0:
        v = v * jnp.float32(loss_weight)
    o_ref[...] = v.astype(o_ref.dtype)


def _to_lanes(x, rows):
    """Flat (rows, 128) view of x; pad only hit for non-(8*128)-aligned sizes."""
    flat = jnp.ravel(x)                     # free reshape, keeps native dtype
    pad = rows * _LANE - flat.shape[0]
    if pad:
        flat = jnp.pad(flat, (0, pad))
    return flat.reshape(rows, _LANE)


def charbonnier_loss(pred, target, weight=None, *, loss_weight=1.0,
                     reduction="mean", eps=1e-12):
    if reduction not in ("none", "mean", "sum"):
        raise ValueError(f"Unsupported reduction mode: {reduction}")
    pred = jnp.asarray(pred)
    target = jnp.asarray(target)
    assert pred.shape == target.shape
    if weight is not None:
        weight = jnp.asarray(weight)

    n_elem = int(pred.size)
    if n_elem == 0:  # degenerate: plain JAX fallback
        elem = jnp.sqrt((pred.astype(jnp.float32) - target.astype(jnp.float32)) ** 2 + eps)
        if weight is not None:
            elem = elem * weight
        if reduction == "none":
            return loss_weight * elem
        return loss_weight * (elem.sum() if reduction == "sum" else elem.mean())

    # rows is a multiple of 8 so (block_rows, 128) tiles are always legal.
    rows = pl.cdiv(n_elem, _SUBLANE * _LANE) * _SUBLANE
    block_rows = min(_MAX_BLOCK_ROWS, rows)
    grid = pl.cdiv(rows, block_rows)
    # Mask is needed iff the grid's padded extent exceeds the true element
    # count (covers both the reshape pad and a partial last grid block).
    needs_mask = (grid * block_rows * _LANE) != n_elem

    p2 = _to_lanes(pred, rows)
    t2 = _to_lanes(target, rows)

    has_weight = weight is not None
    if has_weight:
        # TODO(synk): fold low-rank weights (e.g. (N,1,H,W)) into the kernel via
        # an index_map instead of materializing the full-size broadcast.
        w_full = weight if weight.shape == pred.shape else jnp.broadcast_to(weight, pred.shape)
        w2 = _to_lanes(w_full, rows)
        operands = (p2, t2, w2)
    else:
        operands = (p2, t2)

    blk = pl.BlockSpec((block_rows, _LANE), lambda i: (i, 0))
    in_specs = [blk] * len(operands)
    in_bytes = sum(int(o.size) * o.dtype.itemsize for o in operands)

    if reduction == "none":
        dtypes = [pred.dtype, target.dtype] + ([weight.dtype] if has_weight else [])
        out_dtype = jnp.result_type(*dtypes)
        if not jnp.issubdtype(out_dtype, jnp.floating):
            out_dtype = jnp.float32
        out_bytes = rows * _LANE * jnp.dtype(out_dtype).itemsize
        out = pl.pallas_call(
            functools.partial(_charb_elem_kernel, eps=float(eps),
                              loss_weight=float(loss_weight), has_weight=has_weight),
            out_shape=jax.ShapeDtypeStruct((rows, _LANE), out_dtype),
            grid=(grid,),
            in_specs=in_specs,
            out_specs=blk,
            compiler_params=pltpu.CompilerParams(dimension_semantics=("parallel",)),
            cost_estimate=pl.CostEstimate(flops=5 * n_elem, transcendentals=n_elem,
                                          bytes_accessed=in_bytes + out_bytes),
        )(*operands)
        return out.reshape(-1)[:n_elem].reshape(pred.shape)

    # 'mean' / 'sum': per-block (8,128) partial sums, fully parallel grid.
    # Weighted 'mean' additionally emits per-block weight partial sums so the
    # denominator (== sum of the broadcast weight, matching BasicSR's
    # weight_reduce_loss for NCHW weights) costs no extra HBM pass.
    emit_wsum = has_weight and reduction == "mean"
    out_rows = grid * _SUBLANE
    blk8 = pl.BlockSpec((_SUBLANE, _LANE), lambda i: (i, 0))
    out_shapes = [jax.ShapeDtypeStruct((out_rows, _LANE), jnp.float32)]
    out_specs = [blk8]
    if emit_wsum:
        out_shapes.append(jax.ShapeDtypeStruct((out_rows, _LANE), jnp.float32))
        out_specs.append(blk8)

    results = pl.pallas_call(
        functools.partial(_charb_partial_sum_kernel, eps=float(eps), n_elem=n_elem,
                          block_rows=block_rows, has_weight=has_weight,
                          emit_wsum=emit_wsum, needs_mask=needs_mask),
        out_shape=tuple(out_shapes),
        grid=(grid,),
        in_specs=in_specs,
        out_specs=tuple(out_specs),
        compiler_params=pltpu.CompilerParams(dimension_semantics=("parallel",)),
        cost_estimate=pl.CostEstimate(
            flops=(6 if has_weight else 4) * n_elem,
            transcendentals=n_elem,
            bytes_accessed=in_bytes + len(out_shapes) * out_rows * _LANE * 4),
    )(*operands)
    if not isinstance(results, (tuple, list)):
        results = (results,)

    total = jnp.sum(results[0])   # tiny (grid*8, 128) reduction in XLA

    if reduction == "sum":
        return loss_weight * total

    # reduction == 'mean' — BasicSR weight_reduce_loss semantics.
    if has_weight:
        denom = jnp.sum(results[1])      # == sum of broadcast weight
    else:
        denom = jnp.float32(n_elem)
    return loss_weight * total / denom


class CharbonnierLoss:
    """JAX/Pallas port of BasicSR CharbonnierLoss (forward only)."""

    def __init__(self, loss_weight=1.0, reduction="mean", eps=1e-12):
        if reduction not in ("none", "mean", "sum"):
            raise ValueError(f"Unsupported reduction mode: {reduction}")
        self.loss_weight = loss_weight
        self.reduction = reduction
        self.eps = eps

    def __call__(self, pred, target, weight=None):
        return charbonnier_loss(pred, target, weight,
                                loss_weight=self.loss_weight,
                                reduction=self.reduction, eps=self.eps)


if __name__ == "__main__":
    key = jax.random.PRNGKey(0)
    k1, k2, k3 = jax.random.split(key, 3)
    N, C, H, W = 2, 4, 16, 16
    pred = jax.random.normal(k1, (N, C, H, W), dtype=jnp.float32)
    target = jax.random.normal(k2, (N, C, H, W), dtype=jnp.float32)
    weight = jax.random.uniform(k3, (N, C, H, W), dtype=jnp.float32)
    weight_b = jax.random.uniform(k3, (N, 1, H, W), dtype=jnp.float32)

    out_mean = jax.block_until_ready(CharbonnierLoss(reduction="mean")(pred, target))
    out_mean_w = jax.block_until_ready(CharbonnierLoss(reduction="mean")(pred, target, weight))
    out_mean_wb = jax.block_until_ready(CharbonnierLoss(reduction="mean")(pred, target, weight_b))
    out_sum = jax.block_until_ready(CharbonnierLoss(reduction="sum")(pred, target))
    out_sum_w = jax.block_until_ready(CharbonnierLoss(reduction="sum")(pred, target, weight))
    out_none = jax.block_until_ready(CharbonnierLoss(reduction="none")(pred, target, weight))

    # Non-128-aligned shape exercises the jnp.pad + in-kernel tail-mask path.
    p_odd = jax.random.normal(k1, (3, 3, 7, 5), dtype=jnp.float32)
    t_odd = jax.random.normal(k2, (3, 3, 7, 5), dtype=jnp.float32)
    out_odd = jax.block_until_ready(CharbonnierLoss(reduction="mean")(p_odd, t_odd))

    # sanity checks against a plain-JAX reference
    ref_elem = jnp.sqrt((pred - target) ** 2 + 1e-12)
    assert jnp.allclose(out_mean, ref_elem.mean(), rtol=1e-5, atol=1e-6)
    assert jnp.allclose(out_sum, ref_elem.sum(), rtol=1e-5, atol=1e-3)
    assert jnp.allclose(out_sum_w, (ref_elem * weight).sum(), rtol=1e-5, atol=1e-3)
    assert jnp.allclose(out_mean_w, (ref_elem * weight).sum() / weight.sum(),
                        rtol=1e-5, atol=1e-6)
    assert jnp.allclose(out_mean_wb,
                        (ref_elem * weight_b).sum() / (weight_b.sum() * C),
                        rtol=1e-5, atol=1e-6)
    assert jnp.allclose(out_none, ref_elem * weight, rtol=1e-5, atol=1e-6)
    assert out_none.shape == (N, C, H, W)
    ref_odd = jnp.sqrt((p_odd - t_odd) ** 2 + 1e-12).mean()
    assert jnp.allclose(out_odd, ref_odd, rtol=1e-5, atol=1e-6)

    print("KERNEL_OK")
</pallas_src>

<mosaic_0001>
module attributes {stable_mosaic.version = 11 : i64} {
  func.func @_charb_partial_sum_kernel(%arg0: i32, %arg1: memref<16x128xf32, #tpu.memory_space<vmem>>, %arg2: memref<16x128xf32, #tpu.memory_space<vmem>>, %arg3: memref<8x128xf32, #tpu.memory_space<vmem>>) attributes {dimension_semantics = [#tpu.dimension_semantics<parallel>], iteration_bounds = array<i64: 1>, scalar_prefetch = 0 : i64, scratch_operands = 0 : i64, tpu.core_type = #tpu.core_type<tc>, window_params = [{transform_indices = @transform_0, window_bounds = array<i64: 16, 128>}, {transform_indices = @transform_1, window_bounds = array<i64: 16, 128>}, {transform_indices = @transform_2, window_bounds = array<i64: 8, 128>}]} {
    %c0 = arith.constant 0 : index
    %c0_0 = arith.constant 0 : index
    %0 = vector.load %arg1[%c0, %c0_0] : memref<16x128xf32, #tpu.memory_space<vmem>>, vector<16x128xf32>
    %c0_1 = arith.constant 0 : index
    %c0_2 = arith.constant 0 : index
    %1 = vector.load %arg2[%c0_1, %c0_2] : memref<16x128xf32, #tpu.memory_space<vmem>>, vector<16x128xf32>
    %2 = arith.subf %0, %1 : vector<16x128xf32>
    %3 = arith.mulf %2, %2 : vector<16x128xf32>
    %cst = arith.constant 9.99999996E-13 : f32
    %4 = vector.broadcast %cst : f32 to vector<16x128xf32>
    %5 = arith.addf %3, %4 : vector<16x128xf32>
    %6 = math.sqrt %5 : vector<16x128xf32>
    %7 = vector.extract_strided_slice %6 {offsets = [0, 0], sizes = [8, 128], strides = [1, 1]} : vector<16x128xf32> to vector<8x128xf32>
    %8 = vector.extract_strided_slice %6 {offsets = [8, 0], sizes = [8, 128], strides = [1, 1]} : vector<16x128xf32> to vector<8x128xf32>
    %9 = arith.addf %7, %8 : vector<8x128xf32>
    %c0_3 = arith.constant 0 : index
    %c0_4 = arith.constant 0 : index
    %10 = vector.load %arg3[%c0_3, %c0_4] : memref<8x128xf32, #tpu.memory_space<vmem>>, vector<8x128xf32>
    tpu.vector_store %arg3[%c0_3, %c0_4], %9 {strides = array<i32>} : memref<8x128xf32, #tpu.memory_space<vmem>>, vector<8x128xf32>,
    return
  }
  func.func @transform_0(%arg0: i32) -> (i32, i32) {
    %c0_i32 = arith.constant 0 : i32
    %c0_i32_0 = arith.constant 0 : i32
    return %arg0, %c0_i32 : i32, i32
  }
  func.func @transform_1(%arg0: i32) -> (i32, i32) {
    %c0_i32 = arith.constant 0 : i32
    %c0_i32_0 = arith.constant 0 : i32
    return %arg0, %c0_i32 : i32, i32
  }
  func.func @transform_2(%arg0: i32) -> (i32, i32) {
    %c0_i32 = arith.constant 0 : i32
    %c0_i32_0 = arith.constant 0 : i32
    return %arg0, %c0_i32 : i32, i32
  }
}

</mosaic_0001>

<bundles_post_ra>
// kernel: tpu_custom_call.1
= control target key start
LH: loop header
LB: loop body
LE: loop exit
PB: predicated region body
PF: predicated region fallthrough
CT: control target
= control target key end

     0   :  { %7 = vsyncpa [#allocation3], 0  ;;  %s214_s0 = inlined_call_operand.hbm [shape: f32[16,128], index: 0, kind: input, shape index: {}]   ;;  %s215_s1 = inlined_call_operand.hbm [shape: f32[16,128], index: 1, kind: input, shape index: {}]   ;;  %s216_s2 = inlined_call_operand.hbm [shape: f32[8,128], index: 2, kind: output, shape index: {}]  }
   0x1   :  { %8 = vsyncpa [#allocation6], 0 }
   0x2   :  { %9 = vsyncpa [#allocation4], 0  ;;  %s14_s11 = sshll.u32 %s214_s0, 4  ;;  %s185_s12 = smov [#allocation2]   ;;  %s15_s11 = int_to_ptr.hbm [resolvable:$true] %s14_s11 }
   0x3   :  { %s16_s13 = sshll.u32 %s185_s12, 4  ;;  %s27_s16 = sshll.u32 %s215_s1, 4  ;;  %s17_s13 = int_to_ptr.vmem [resolvable:$true] %s16_s13  ;;  %s28_s16 = int_to_ptr.hbm [resolvable:$true] %s27_s16 }
   0x4   :  { %s186_s17 = smov 128   ;;  %s187_s18 = smov 8  }
   0x5   :  { %22 = dma.hbm_to_vmem [thread:$0]  %s15_s11, 256, %s17_s13, [#allocation3], %s186_s17, %s186_s17, %s187_s18  }
   0x6   :  { %s188_s19 = smov [#allocation5]  }
   0x7   :  { %s29_s20 = sshll.u32 %s188_s19, 4  ;;  %s30_s20 = int_to_ptr.vmem [resolvable:$true] %s29_s20 }
   0x8   :  { %35 = dma.hbm_to_vmem [thread:$0]  %s28_s16, 256, %s30_s20, [#allocation6], %s186_s17, %s186_s17, %s187_s18  }
   0x9   :  { %179 = dma.done.wait [#allocation3], 256  }
   0xa   :  { %180 = vsyncadd [#allocation3], 4294967040 }
   0xb   :  { %181 = dma.done.wait [#allocation6], 256  }
   0xc   :  { %182 = vsyncadd [#allocation6], 4294967040  ;;  %v44_v0 = vld [vmem:[#allocation2] sm:$0xff]  ;;  %v45_v1 = vld [vmem:[#allocation2 + $0x8] sm:$0xff]  ;;  %s189_s0 = smov [#allocation7]   ;;  %s87_s23 = sshll.u32 %s216_s2, 4  ;;  %s88_s23 = int_to_ptr.hbm [resolvable:$true] %s87_s23 }
   0xd   :  { %v46_v2 = vld [vmem:[#allocation5] sm:$0xff]  ;;  %v47_v3 = vld [vmem:[#allocation5 + $0x8] sm:$0xff]  ;;  %s85_s1 = sshll.u32 %s189_s0, 4  ;;  %s86_s1 = int_to_ptr.vmem [resolvable:$true] %s85_s1 }
   0xe   :  { %v48_v4 = vsub.f32 %v44_v0, %v46_v2  ;;  %v49_v5 = vsub.f32 %v45_v1, %v47_v3 }
  0x10   :  { %v50_v6 = vmul.f32 %v48_v4, %v48_v4  ;;  %v51_v7 = vmul.f32 %v49_v5, %v49_v5 }
  0x12   :  { %v52_v8 = vadd.f32 1e-12, %v50_v6  ;;  %v53_v9 = vadd.f32 1e-12, %v51_v7 }
  0x14   :  { %103 = vrsqrt.f32 %v52_v8  ;;  %vm61_vm0 = vcmp.eq.f32.partialorder %v52_v8, inf  ;;  %v64_v21 = vand.u32 2147483648, %v52_v8  ;;  %vm63_vm1 = vcmp.eq.f32.partialorder %v52_v8, 0.0 }
  0x15   :  { %105 = vrsqrt.f32 %v53_v9  ;;  %vm73_vm2 = vcmp.eq.f32.partialorder %v53_v9, inf  ;;  %v76_v24 = vand.u32 2147483648, %v53_v9  ;;  %vm75_vm3 = vcmp.eq.f32.partialorder %v53_v9, 0.0 }
  0x1a   :  { %v104_v10 = vpop.eup %103 }
  0x1b   :  { %v106_v11 = vpop.eup %105  ;;  %v55_v12 = vmul.f32 %v104_v10, %v52_v8 }
  0x1c   :  { %v67_v13 = vmul.f32 %v106_v11, %v53_v9 }
  0x1d   :  { %v56_v14 = vmul.f32 %v104_v10, %v55_v12 }
  0x1e   :  { %v68_v15 = vmul.f32 %v106_v11, %v67_v13 }
  0x1f   :  { %v57_v16 = vmul.f32 0.5, %v56_v14 }
  0x20   :  { %v69_v17 = vmul.f32 0.5, %v68_v15 }
  0x21   :  { %v58_v18 = vsub.f32 1.5, %v57_v16 }
  0x22   :  { %v70_v19 = vsub.f32 1.5, %v69_v17 }
  0x23   :  { %v59_v20 = vmul.f32 %v104_v10, %v58_v18 }
  0x24   :  { %v71_v22 = vmul.f32 %v106_v11, %v70_v19 }
  0x25   :  { %v60_v23 = vmul.f32 %v59_v20, %v52_v8 }
  0x26   :  { %v72_v25 = vmul.f32 %v71_v22, %v53_v9 }
  0x27   :  { %v62_v26 = vsel %vm61_vm0, %v52_v8, %v60_v23 }
  0x28   :  { %v65_v27 = vsel %vm63_vm1, %v64_v21, %v62_v26  ;;  %v74_v28 = vsel %vm73_vm2, %v53_v9, %v72_v25 }
  0x29   :  { %v77_v29 = vsel %vm75_vm3, %v76_v24, %v74_v28 }
  0x2a   :  { %v78_v30 = vadd.f32 %v77_v29, %v65_v27 }
  0x2c   :  { %79 = vst [vmem:[#allocation7] sm:$0xff] %v78_v30 }
  0x2d   :  { %90 = dma.vmem_to_hbm [thread:$0]  %s86_s1, 128, %s88_s23, [#allocation4]  }
  0x2e   :  { %183 = dma.done.wait [#allocation4], 128  }
  0x2f   :  { %184 = vsyncadd [#allocation4], 4294967168 }
  0x30   :  { %95 = vsyncpa [#allocation3], 1 }
  0x31   :  { %96 = vsyncpa [#allocation6], 1 }
  0x32   :  { %97 = vsyncpa [#allocation4], 1 }

</bundles_post_ra>
